<compile_context>
chip_gen: v7x
topology: tpu7x:2x2x1
jax: 0.10.0
libtpu: 0.0.40
codegen_flags: <defaults>
</compile_context>

<pallas_src>
import functools

import jax
import jax.numpy as jnp
from jax import lax
from jax.experimental import pallas as pl
from jax.experimental.pallas import tpu as pltpu

_LANES = 128
_SUBLANES = 8
# (1024, 128) f32 tile = 512 KiB; x 2 inputs x 2 pipeline buffers = 2 MiB of
# live VMEM -> comfortably under the scoped VMEM default on v5e/v6e/v7x.
_MAX_TILE_ROWS = 1024


def _round_up(x, m):
    return ((x + m - 1) // m) * m


def _dice_kernel(x_ref, t_ref, acc_ref, *, n_valid, tile_rows, needs_mask):
    """One grid step: accumulate partial sums for the dice loss.

    acc_ref block is (1, 2, 8, 128) f32 and stays resident across the inner
    ("arbitrary") grid axis:
      acc[0,0] += per-lane partial of sigmoid(x) * t      (intersection)
      acc[0,1] += per-lane partial of sigmoid(x) + t      (fused denominator)
    Only cross-vreg VPU adds happen per step; the cross-lane reduction is
    deferred to the wrapper.
    """
    s_idx = pl.program_id(1)

    @pl.when(s_idx == 0)
    def _():
        acc_ref[...] = jnp.zeros_like(acc_ref)

    x = x_ref[...].astype(jnp.float32)
    t = t_ref[...].astype(jnp.float32)
    s = jax.nn.sigmoid(x)

    if needs_mask:
        # Zero out lane-pad elements and the ragged last block's
        # out-of-bounds rows (which hold unspecified VMEM contents).
        c_idx = pl.program_id(0)
        n_inner = pl.num_programs(1)
        base = (c_idx * n_inner + s_idx) * (tile_rows * _LANES)
        row = lax.broadcasted_iota(jnp.int32, (tile_rows, _LANES), 0)
        lane = lax.broadcasted_iota(jnp.int32, (tile_rows, _LANES), 1)
        valid = (base + row * _LANES + lane) < n_valid
        s = jnp.where(valid, s, 0.0)
        t = jnp.where(valid, t, 0.0)

    k = tile_rows // _SUBLANES
    acc_ref[0, 0] += jnp.sum((s * t).reshape(k, _SUBLANES, _LANES), axis=0)
    acc_ref[0, 1] += jnp.sum((s + t).reshape(k, _SUBLANES, _LANES), axis=0)


def dice_loss(inputs, targets, smooth=1.0):
    """Pallas TPU forward pass matching PyTorch DiceLoss.forward."""
    n = inputs.size
    assert targets.size == n

    x_flat = inputs.reshape(-1)
    t_flat = targets.reshape(-1)

    # Pad only when n is not a multiple of 128; common NCHW sizes reshape
    # with zero copies.
    rows, rem = divmod(n, _LANES)
    if rem:
        x_flat = jnp.pad(x_flat, (0, _LANES - rem))
        t_flat = jnp.pad(t_flat, (0, _LANES - rem))
        rows += 1
    x2 = x_flat.reshape(rows, _LANES)
    t2 = t_flat.reshape(rows, _LANES)

    tile_rows = min(_MAX_TILE_ROWS, _round_up(rows, _SUBLANES))
    total_blocks = pl.cdiv(rows, tile_rows)
    # Two-way split across TensorCores (helps v7x; harmless on 1-TC chips).
    num_splits = 2 if (total_blocks >= 2 and total_blocks % 2 == 0) else 1
    blocks_per_split = total_blocks // num_splits
    needs_mask = (total_blocks * tile_rows * _LANES) != n

    kernel = functools.partial(
        _dice_kernel, n_valid=n, tile_rows=tile_rows, needs_mask=needs_mask)

    def in_map(c, s):
        return (c * blocks_per_split + s, 0)

    partials = pl.pallas_call(
        kernel,
        out_shape=jax.ShapeDtypeStruct(
            (num_splits, 2, _SUBLANES, _LANES), jnp.float32),
        grid=(num_splits, blocks_per_split),
        in_specs=[
            pl.BlockSpec((tile_rows, _LANES), in_map),
            pl.BlockSpec((tile_rows, _LANES), in_map),
        ],
        out_specs=pl.BlockSpec(
            (1, 2, _SUBLANES, _LANES), lambda c, s: (c, 0, 0, 0)),
        compiler_params=pltpu.CompilerParams(
            dimension_semantics=("parallel", "arbitrary"),
        ),
    )(x2, t2)

    # Tiny epilogue on (num_splits, 2, 8, 128) partials.
    intersection = jnp.sum(partials[:, 0])
    denom = jnp.sum(partials[:, 1])
    dice = (2.0 * intersection + smooth) / (denom + smooth)
    return 1.0 - dice


def dice_loss_ref(inputs, targets, smooth=1.0):
    s = jax.nn.sigmoid(inputs.astype(jnp.float32).reshape(-1))
    t = targets.astype(jnp.float32).reshape(-1)
    inter = jnp.sum(s * t)
    dice = (2.0 * inter + smooth) / (jnp.sum(s) + jnp.sum(t) + smooth)
    return 1.0 - dice


if __name__ == "__main__":
    key = jax.random.PRNGKey(0)
    k1, k2, k3, k4 = jax.random.split(key, 4)

    # Primary small NCHW case: logits + binary targets (matches the module).
    x = jax.random.normal(k1, (2, 4, 16, 16), dtype=jnp.float32)
    t = (jax.random.uniform(k2, (2, 4, 16, 16)) > 0.5).astype(jnp.float32)
    loss = dice_loss(x, t)
    jax.block_until_ready(loss)
    ref = dice_loss_ref(x, t)
    assert jnp.allclose(loss, ref, atol=1e-5, rtol=1e-5), (loss, ref)

    # Ragged / masked path: size not a multiple of 128, non-default smooth.
    x_odd = jax.random.normal(k3, (3, 5, 7, 9), dtype=jnp.float32)
    t_odd = (jax.random.uniform(k4, (3, 5, 7, 9)) > 0.5).astype(jnp.float32)
    loss_odd = dice_loss(x_odd, t_odd, smooth=0.5)
    jax.block_until_ready(loss_odd)
    ref_odd = dice_loss_ref(x_odd, t_odd, smooth=0.5)
    assert jnp.allclose(loss_odd, ref_odd, atol=1e-5, rtol=1e-5), (loss_odd, ref_odd)

    # Multi-block + two-core-split path with bf16 logits (kernel upcasts).
    xb = jax.random.normal(k1, (2, 4, 128, 144), dtype=jnp.bfloat16)
    tb = (jax.random.uniform(k2, (2, 4, 128, 144)) > 0.5).astype(jnp.bfloat16)
    loss_b = dice_loss(xb, tb)
    jax.block_until_ready(loss_b)
    ref_b = dice_loss_ref(xb, tb)
    assert jnp.allclose(loss_b, ref_b, atol=1e-3, rtol=1e-3), (loss_b, ref_b)

    print("KERNEL_OK")
</pallas_src>

<mosaic_0001>
module attributes {stable_mosaic.version = 11 : i64} {
  func.func @_dice_kernel(%arg0: i32, %arg1: i32, %arg2: memref<16x128xf32, #tpu.memory_space<vmem>>, %arg3: memref<16x128xf32, #tpu.memory_space<vmem>>, %arg4: memref<1x2x8x128xf32, #tpu.memory_space<vmem>>) attributes {dimension_semantics = [#tpu.dimension_semantics<parallel>, #tpu.dimension_semantics<arbitrary>], iteration_bounds = array<i64: 1, 1>, scalar_prefetch = 0 : i64, scratch_operands = 0 : i64, tpu.core_type = #tpu.core_type<tc>, window_params = [{transform_indices = @transform_0, window_bounds = array<i64: 16, 128>}, {transform_indices = @transform_1, window_bounds = array<i64: 16, 128>}, {transform_indices = @transform_2, window_bounds = array<i64: 1, 2, 8, 128>}]} {
    %c0_i32 = arith.constant 0 : i32
    %0 = arith.cmpi eq, %arg1, %c0_i32 : i32
    %1 = arith.extui %0 : i1 to i32
    %c0_i32_0 = arith.constant 0 : i32
    %2 = arith.cmpi ne, %1, %c0_i32_0 : i32
    scf.if %2 {
      %cst_21 = arith.constant 0.000000e+00 : f32
      %28 = vector.broadcast %cst_21 : f32 to vector<1x2x8x128xf32>
      %c0_22 = arith.constant 0 : index
      %c0_23 = arith.constant 0 : index
      %c0_24 = arith.constant 0 : index
      %c0_25 = arith.constant 0 : index
      %29 = vector.load %arg4[%c0_22, %c0_23, %c0_24, %c0_25] : memref<1x2x8x128xf32, #tpu.memory_space<vmem>>, vector<1x2x8x128xf32>
      tpu.vector_store %arg4[%c0_22, %c0_23, %c0_24, %c0_25], %28 {strides = array<i32>} : memref<1x2x8x128xf32, #tpu.memory_space<vmem>>, vector<1x2x8x128xf32>,
    } else {
    }
    %c0 = arith.constant 0 : index
    %c0_1 = arith.constant 0 : index
    %3 = vector.load %arg2[%c0, %c0_1] : memref<16x128xf32, #tpu.memory_space<vmem>>, vector<16x128xf32>
    %c0_2 = arith.constant 0 : index
    %c0_3 = arith.constant 0 : index
    %4 = vector.load %arg3[%c0_2, %c0_3] : memref<16x128xf32, #tpu.memory_space<vmem>>, vector<16x128xf32>
    %5 = arith.negf %3 : vector<16x128xf32>
    %6 = math.exp %5 : vector<16x128xf32>
    %cst = arith.constant 1.000000e+00 : f32
    %7 = vector.broadcast %cst : f32 to vector<16x128xf32>
    %8 = arith.addf %7, %6 : vector<16x128xf32>
    %9 = arith.divf %7, %8 : vector<16x128xf32>
    %c0_4 = arith.constant 0 : index
    %c0_5 = arith.constant 0 : index
    %c0_6 = arith.constant 0 : index
    %c0_7 = arith.constant 0 : index
    %10 = vector.load %arg4[%c0_4, %c0_5, %c0_6, %c0_7] : memref<1x2x8x128xf32, #tpu.memory_space<vmem>>, vector<1x1x8x128xf32>
    %11 = vector.shape_cast %10 : vector<1x1x8x128xf32> to vector<8x128xf32>
    %12 = arith.mulf %9, %4 : vector<16x128xf32>
    %13 = vector.shape_cast %12 : vector<16x128xf32> to vector<2x8x128xf32>
    %cst_8 = arith.constant dense<0.000000e+00> : vector<8x128xf32>
    %14 = vector.multi_reduction <add>, %13, %cst_8 [0] : vector<2x8x128xf32> to vector<8x128xf32>
    %15 = arith.addf %11, %14 : vector<8x128xf32>
    %c0_9 = arith.constant 0 : index
    %c0_10 = arith.constant 0 : index
    %c0_11 = arith.constant 0 : index
    %c0_12 = arith.constant 0 : index
    %16 = vector.load %arg4[%c0_9, %c0_10, %c0_11, %c0_12] : memref<1x2x8x128xf32, #tpu.memory_space<vmem>>, vector<1x1x8x128xf32>
    %17 = vector.shape_cast %16 : vector<1x1x8x128xf32> to vector<8x128xf32>
    %18 = vector.shape_cast %15 : vector<8x128xf32> to vector<1x1x8x128xf32>
    tpu.vector_store %arg4[%c0_9, %c0_10, %c0_11, %c0_12], %18 {strides = array<i32>} : memref<1x2x8x128xf32, #tpu.memory_space<vmem>>, vector<1x1x8x128xf32>,
    %c0_13 = arith.constant 0 : index
    %c1 = arith.constant 1 : index
    %c0_14 = arith.constant 0 : index
    %c0_15 = arith.constant 0 : index
    %19 = vector.load %arg4[%c0_13, %c1, %c0_14, %c0_15] : memref<1x2x8x128xf32, #tpu.memory_space<vmem>>, vector<1x1x8x128xf32>
    %20 = vector.shape_cast %19 : vector<1x1x8x128xf32> to vector<8x128xf32>
    %21 = arith.addf %9, %4 : vector<16x128xf32>
    %22 = vector.shape_cast %21 : vector<16x128xf32> to vector<2x8x128xf32>
    %cst_16 = arith.constant dense<0.000000e+00> : vector<8x128xf32>
    %23 = vector.multi_reduction <add>, %22, %cst_16 [0] : vector<2x8x128xf32> to vector<8x128xf32>
    %24 = arith.addf %20, %23 : vector<8x128xf32>
    %c0_17 = arith.constant 0 : index
    %c1_18 = arith.constant 1 : index
    %c0_19 = arith.constant 0 : index
    %c0_20 = arith.constant 0 : index
    %25 = vector.load %arg4[%c0_17, %c1_18, %c0_19, %c0_20] : memref<1x2x8x128xf32, #tpu.memory_space<vmem>>, vector<1x1x8x128xf32>
    %26 = vector.shape_cast %25 : vector<1x1x8x128xf32> to vector<8x128xf32>
    %27 = vector.shape_cast %24 : vector<8x128xf32> to vector<1x1x8x128xf32>
    tpu.vector_store %arg4[%c0_17, %c1_18, %c0_19, %c0_20], %27 {strides = array<i32>} : memref<1x2x8x128xf32, #tpu.memory_space<vmem>>, vector<1x1x8x128xf32>,
    return
  }
  func.func @transform_0(%arg0: i32, %arg1: i32) -> (i32, i32) {
    %c1_i32 = arith.constant 1 : i32
    %0 = arith.muli %arg0, %c1_i32 : i32
    %1 = arith.addi %0, %arg1 : i32
    %c0_i32 = arith.constant 0 : i32
    %c0_i32_0 = arith.constant 0 : i32
    return %1, %c0_i32 : i32, i32
  }
  func.func @transform_1(%arg0: i32, %arg1: i32) -> (i32, i32) {
    %c1_i32 = arith.constant 1 : i32
    %0 = arith.muli %arg0, %c1_i32 : i32
    %1 = arith.addi %0, %arg1 : i32
    %c0_i32 = arith.constant 0 : i32
    %c0_i32_0 = arith.constant 0 : i32
    return %1, %c0_i32 : i32, i32
  }
  func.func @transform_2(%arg0: i32, %arg1: i32) -> (i32, i32, i32, i32) {
    %c0_i32 = arith.constant 0 : i32
    %c0_i32_0 = arith.constant 0 : i32
    %c0_i32_1 = arith.constant 0 : i32
    %c0_i32_2 = arith.constant 0 : i32
    return %arg0, %c0_i32, %c0_i32_0, %c0_i32_1 : i32, i32, i32, i32
  }
}

</mosaic_0001>

<bundles_post_ra>
// kernel: tpu_custom_call.1
= control target key start
LH: loop header
LB: loop body
LE: loop exit
PB: predicated region body
PF: predicated region fallthrough
CT: control target
= control target key end

     0   :  { %7 = vsyncpa [#allocation3], 0  ;;  %s258_s0 = inlined_call_operand.hbm [shape: f32[16,128], index: 0, kind: input, shape index: {}]   ;;  %s259_s1 = inlined_call_operand.hbm [shape: f32[16,128], index: 1, kind: input, shape index: {}]   ;;  %s260_s2 = inlined_call_operand.hbm [shape: f32[1,2,8,128], index: 2, kind: output, shape index: {}]  }
   0x1   :  { %8 = vsyncpa [#allocation6], 0 }
   0x2   :  { %9 = vsyncpa [#allocation4], 0  ;;  %s193_s9 = smov [#allocation2]   ;;  %s121_s13 = scalar_lea.hbm %s258_s0, 256 }
   0x3   :  { %s19_s10 = sshll.u32 %s193_s9, 4  ;;  %p122_p0 = scmp.ne.s32.totalorder %s258_s0, %s121_s13  ;;  %s20_s10 = int_to_ptr.vmem [resolvable:$true] %s19_s10 }
   0x4   :  { %p125_p1 = scmp.lt.u32.totalorder %s121_s13, %s258_s0 }
   0x6   :  { %p127_p2 = pnand %p125_p1, %p122_p0 }
   0x8   :  { %130 = shalt.err (!%p127_p2)
}
   0x9   :  { %s131_s18 = scalar_lea.vmem %s20_s10, 256  ;;  %p136_p4 = scmp.lt.s32.totalorder %s20_s10, %s20_s10 }
   0xa   :  { %p132_p3 = scmp.ne.s32.totalorder %s20_s10, %s131_s18  ;;  %p137_p5 = scmp.lt.s32.totalorder %s131_s18, %s131_s18 }
   0xc   :  { %p138_p6 = por %p137_p5, %p136_p4 }
   0xe   :  { %p139_p7 = pnand %p138_p6, %p132_p3 }
  0x10   :  { %142 = shalt.err (!%p139_p7)
}
  0x11   :  { %s194_s19 = smov 128   ;;  %s195_s20 = smov 8  }
  0x12   :  { %25 = dma.hbm_to_vmem [thread:$0]  %s258_s0, 256, %s20_s10, [#allocation3], %s194_s19, %s194_s19, %s195_s20  }
  0x13   :  { %s196_s23 = smov [#allocation5]   ;;  %s143_s27 = scalar_lea.hbm %s259_s1, 256 }
  0x14   :  { %s35_s24 = sshll.u32 %s196_s23, 4  ;;  %p144_p8 = scmp.ne.s32.totalorder %s259_s1, %s143_s27  ;;  %s36_s24 = int_to_ptr.vmem [resolvable:$true] %s35_s24 }
  0x15   :  { %p147_p9 = scmp.lt.u32.totalorder %s143_s27, %s259_s1 }
  0x17   :  { %p149_p10 = pnand %p147_p9, %p144_p8 }
  0x19   :  { %152 = shalt.err (!%p149_p10)
}
  0x1a   :  { %s153_s4 = scalar_lea.vmem %s36_s24, 256  ;;  %p158_p12 = scmp.lt.s32.totalorder %s36_s24, %s36_s24 }
  0x1b   :  { %p154_p11 = scmp.ne.s32.totalorder %s36_s24, %s153_s4  ;;  %p159_p13 = scmp.lt.s32.totalorder %s153_s4, %s153_s4 }
  0x1d   :  { %p160_p0 = por %p159_p13, %p158_p12 }
  0x1f   :  { %p161_p1 = pnand %p160_p0, %p154_p11 }
  0x21   :  { %164 = shalt.err (!%p161_p1)
}
  0x22   :  { %41 = dma.hbm_to_vmem [thread:$0]  %s259_s1, 256, %s36_s24, [#allocation6], %s194_s19, %s194_s19, %s195_s20  }
  0x23   :  { %187 = dma.done.wait [#allocation3], 256  }
  0x24   :  { %188 = vsyncadd [#allocation3], 4294967040 }
  0x25   :  { %189 = dma.done.wait [#allocation6], 256  }
  0x26   :  { %190 = vsyncadd [#allocation6], 4294967040  ;;  %v58_v0 = vld [vmem:[#allocation2] sm:$0xff]  ;;  %v59_v1 = vld [vmem:[#allocation2 + $0x8] sm:$0xff]  ;;  %s197_s1 = smov [#allocation7]  }
  0x27   :  { %v105_v2 = vmul.f32 -1.442695, %v58_v0  ;;  %v106_v3 = vmul.f32 -1.442695, %v59_v1  ;;  %v60_v8 = vld [vmem:[#allocation5] sm:$0xff]  ;;  %v61_v9 = vld [vmem:[#allocation5 + $0x8] sm:$0xff] }
  0x28   :  { %s92_s6 = sshll.u32 %s197_s1, 4  ;;  %s93_s6 = int_to_ptr.vmem [resolvable:$true] %s92_s6 }
  0x29   :  { %113 = vpow2.f32 %v105_v2  ;;  %s165_s7 = scalar_lea.vmem %s93_s6, 256  ;;  %p170_p3 = scmp.lt.s32.totalorder %s93_s6, %s93_s6 }
  0x2a   :  { %115 = vpow2.f32 %v106_v3  ;;  %p166_p2 = scmp.ne.s32.totalorder %s93_s6, %s165_s7  ;;  %p171_p4 = scmp.lt.s32.totalorder %s165_s7, %s165_s7 }
  0x2c   :  { %p172_p5 = por %p171_p4, %p170_p3 }
  0x2e   :  { %p173_p6 = pnand %p172_p5, %p166_p2 }
  0x33   :  { %v114_v4 = vpop.eup %113 }
  0x34   :  { %v116_v5 = vpop.eup %115  ;;  %v68_v6 = vadd.f32 1.0, %v114_v4 }
  0x35   :  { %v69_v7 = vadd.f32 1.0, %v116_v5 }
  0x36   :  { %117 = vrcp.f32 %v68_v6 }
  0x37   :  { %119 = vrcp.f32 %v69_v7 }
  0x40   :  { %v118_v10 = vpop.eup %117 }
  0x41   :  { %v120_v11 = vpop.eup %119  ;;  %v75_v12 = vmul.f32 %v118_v10, %v60_v8  ;;  %v82_v13 = vadd.f32 %v118_v10, %v60_v8 }
  0x42   :  { %v76_v14 = vmul.f32 %v120_v11, %v61_v9  ;;  %v83_v15 = vadd.f32 %v120_v11, %v61_v9 }
  0x44   :  { %v77_v16 = vadd.f32 %v76_v14, %v75_v12  ;;  %v84_v17 = vadd.f32 %v83_v15, %v82_v13 }
  0x46   :  { %79 = vst [vmem:[#allocation7] sm:$0xff] %v77_v16  ;;  %86 = vst [vmem:[#allocation7 + $0x8] sm:$0xff] %v84_v17 }
  0x47   :  { %176 = shalt.err (!%p173_p6)
}
  0x48   :  { %s177_s10 = scalar_lea.hbm %s260_s2, 256 }
  0x49   :  { %p178_p7 = scmp.ne.s32.totalorder %s260_s2, %s177_s10  ;;  %p181_p8 = scmp.lt.u32.totalorder %s177_s10, %s260_s2 }
  0x4b   :  { %p183_p9 = pnand %p181_p8, %p178_p7 }
  0x4d   :  { %186 = shalt.err (!%p183_p9)
}
  0x4e   :  { %98 = dma.vmem_to_hbm [thread:$0]  %s93_s6, 256, %s260_s2, [#allocation4], %s194_s19, %s194_s19, %s195_s20  }
  0x4f   :  { %191 = dma.done.wait [#allocation4], 256  }
  0x50   :  { %192 = vsyncadd [#allocation4], 4294967040 }
  0x51   :  { %102 = vsyncpa [#allocation3], 1 }
  0x52   :  { %103 = vsyncpa [#allocation6], 1 }
  0x53   :  { %104 = vsyncpa [#allocation4], 1 }

</bundles_post_ra>
